<compile_context>
chip_gen: v6e
topology: v6e:2x2x1
jax: 0.10.0
libtpu: 0.0.40
codegen_flags: <defaults>
</compile_context>

<pallas_src>
import jax
import jax.numpy as jnp
from jax.experimental import pallas as pl
from jax.experimental.pallas import tpu as pltpu


def _nn_shallow_kernel(x_ref, w1_ref, b1_ref, w2_ref, b2_ref, w3_ref, b3_ref,
                       o_ref):
    """One batch tile of Linear->ReLU->Linear->ReLU->Linear, fused in VMEM."""
    # Cast x to the matmul dtype in-kernel (cheap VPU op, no extra HBM pass).
    x = x_ref[...].astype(w1_ref.dtype)              # (TILE_B, IN)

    # fc1 + ReLU: MXU matmul, f32 accumulation; bias/ReLU in f32 on the VPU.
    h = jnp.dot(x, w1_ref[...], preferred_element_type=jnp.float32) + b1_ref[...]
    h = jnp.maximum(h, 0.0)

    # fc2 + ReLU
    h = jnp.dot(h.astype(w2_ref.dtype), w2_ref[...],
                preferred_element_type=jnp.float32) + b2_ref[...]
    h = jnp.maximum(h, 0.0)

    # fc3 (unpadded output block; out_size equals the full array dim)
    out = jnp.dot(h.astype(w3_ref.dtype), w3_ref[...],
                  preferred_element_type=jnp.float32) + b3_ref[...]
    o_ref[...] = out.astype(o_ref.dtype)


def prepare_params(params, *, mm_dtype=jnp.bfloat16):
    """One-time prep: weights in matmul dtype, biases f32 (1, N). Hoisted out
    of the forward pass so the per-call work is just the Pallas launch."""
    (w1, b1), (w2, b2), (w3, b3) = params
    return (
        w1.astype(mm_dtype), jnp.reshape(b1, (1, -1)).astype(jnp.float32),
        w2.astype(mm_dtype), jnp.reshape(b2, (1, -1)).astype(jnp.float32),
        w3.astype(mm_dtype), jnp.reshape(b3, (1, -1)).astype(jnp.float32),
    )


def nn_shallow_forward(x, prepared, *, tile_b=8192):
    """Fused 3-layer MLP forward. x: (B, input_size) f32 -> (B, output_size) f32."""
    w1, b1, w2, b2, w3, b3 = prepared
    B, in_size = x.shape
    out_size = w3.shape[1]

    # --- batch tile selection ------------------------------------------------
    # Generation-safe cap: at 16384 rows the double-buffered x/out blocks plus
    # the f32 intermediates stay well under the 32 MiB scoped VMEM budget that
    # is safe on v5e/v6e/v7x alike.
    tile_b = min(tile_b, 16384, B)
    if tile_b < B:
        tile_b = max(16, (tile_b // 16) * 16)        # sublane-friendly tiles
    # v7x megacore: for moderate/large B keep >= 2 grid steps so the
    # "parallel" batch axis can be split across both TensorCores.
    if B >= 2048 and pl.cdiv(B, tile_b) < 2:
        half = max(16, (((B + 1) // 2 + 15) // 16) * 16)
        tile_b = min(tile_b, half)
    grid = (pl.cdiv(B, tile_b),)

    def resident(a):
        # Full-extent block, constant index_map -> stays in VMEM across steps.
        return pl.BlockSpec(a.shape, lambda i: (0,) * a.ndim)

    return pl.pallas_call(
        _nn_shallow_kernel,
        out_shape=jax.ShapeDtypeStruct((B, out_size), jnp.float32),
        grid=grid,
        in_specs=[
            pl.BlockSpec((tile_b, in_size), lambda i: (i, 0)),   # x: batch-tiled
            resident(w1), resident(b1),
            resident(w2), resident(b2),
            resident(w3), resident(b3),
        ],
        out_specs=pl.BlockSpec((tile_b, out_size), lambda i: (i, 0)),
        compiler_params=pltpu.CompilerParams(
            dimension_semantics=("parallel",),     # v7x: batch axis over both TCs
            vmem_limit_bytes=32 * 1024 * 1024,     # safe on v5e/v6e/v7x at this tile cap
        ),
    )(x, w1, b1, w2, b2, w3, b3)


def init_params(key, input_size, hidden_size, output_size):
    """nn.Linear-style init: uniform(-1/sqrt(fan_in), 1/sqrt(fan_in)).

    Weights stored pre-transposed as (in_features, out_features); biases as
    (1, out_features) so they broadcast over the batch inside the kernel.
    """
    dims = [(input_size, hidden_size),
            (hidden_size, hidden_size),
            (hidden_size, output_size)]
    params = []
    for fan_in, fan_out in dims:
        key, kw, kb = jax.random.split(key, 3)
        bound = 1.0 / jnp.sqrt(jnp.float32(fan_in))
        w = jax.random.uniform(kw, (fan_in, fan_out), jnp.float32, -bound, bound)
        b = jax.random.uniform(kb, (1, fan_out), jnp.float32, -bound, bound)
        params.append((w, b))
    return params


def nn_shallow_ref(x, params, *, mm_dtype=jnp.bfloat16):
    """Plain-JAX reference with the same matmul dtype / f32 accumulation as the
    kernel. Against a pure-f32 (PyTorch) reference expect ~1e-2 rel. error from
    the bf16 matmuls; accumulation is f32 in both paths."""
    (w1, b1), (w2, b2), (w3, b3) = params
    h = jnp.dot(x.astype(mm_dtype), w1.astype(mm_dtype),
                preferred_element_type=jnp.float32) + b1
    h = jnp.maximum(h, 0.0)
    h = jnp.dot(h.astype(mm_dtype), w2.astype(mm_dtype),
                preferred_element_type=jnp.float32) + b2
    h = jnp.maximum(h, 0.0)
    return jnp.dot(h.astype(mm_dtype), w3.astype(mm_dtype),
                   preferred_element_type=jnp.float32) + b3


if __name__ == "__main__":
    key = jax.random.PRNGKey(0)
    batch, input_size, hidden_size, output_size = 64, 32, 64, 16

    key, kx = jax.random.split(key)
    x = jax.random.normal(kx, (batch, input_size), jnp.float32)
    params = init_params(key, input_size, hidden_size, output_size)
    prepared = prepare_params(params)

    ref = nn_shallow_ref(x, params)

    # 1) Default path: single grid step (batch <= tile_b), weights resident.
    out1 = jax.block_until_ready(nn_shallow_forward(x, prepared))
    assert out1.shape == (batch, output_size)
    assert jnp.allclose(out1, ref, atol=1e-3, rtol=1e-3), "mismatch (single-tile)"

    # 2) Small tile to exercise the multi-step batch grid / pipelining path.
    out2 = jax.block_until_ready(nn_shallow_forward(x, prepared, tile_b=16))
    assert out2.shape == (batch, output_size)
    assert jnp.allclose(out2, ref, atol=1e-3, rtol=1e-3), "mismatch (multi-tile)"

    print("KERNEL_OK")
</pallas_src>

<mosaic_0001>
module attributes {stable_mosaic.version = 11 : i64} {
  func.func @_nn_shallow_kernel(%arg0: i32, %arg1: memref<64x32xf32, #tpu.memory_space<vmem>>, %arg2: memref<32x64xbf16, #tpu.memory_space<vmem>>, %arg3: memref<1x64xf32, #tpu.memory_space<vmem>>, %arg4: memref<64x64xbf16, #tpu.memory_space<vmem>>, %arg5: memref<1x64xf32, #tpu.memory_space<vmem>>, %arg6: memref<64x16xbf16, #tpu.memory_space<vmem>>, %arg7: memref<1x16xf32, #tpu.memory_space<vmem>>, %arg8: memref<64x16xf32, #tpu.memory_space<vmem>>) attributes {dimension_semantics = [#tpu.dimension_semantics<parallel>], iteration_bounds = array<i64: 1>, scalar_prefetch = 0 : i64, scratch_operands = 0 : i64, tpu.core_type = #tpu.core_type<tc>, window_params = [{transform_indices = @transform_0, window_bounds = array<i64: 64, 32>}, {pipeline_mode = #tpu.pipeline_mode<synchronous>, transform_indices = @transform_1, window_bounds = array<i64: 32, 64>}, {pipeline_mode = #tpu.pipeline_mode<synchronous>, transform_indices = @transform_2, window_bounds = array<i64: 1, 64>}, {pipeline_mode = #tpu.pipeline_mode<synchronous>, transform_indices = @transform_3, window_bounds = array<i64: 64, 64>}, {pipeline_mode = #tpu.pipeline_mode<synchronous>, transform_indices = @transform_4, window_bounds = array<i64: 1, 64>}, {pipeline_mode = #tpu.pipeline_mode<synchronous>, transform_indices = @transform_5, window_bounds = array<i64: 64, 16>}, {pipeline_mode = #tpu.pipeline_mode<synchronous>, transform_indices = @transform_6, window_bounds = array<i64: 1, 16>}, {transform_indices = @transform_7, window_bounds = array<i64: 64, 16>}]} {
    %c0 = arith.constant 0 : index
    %c0_0 = arith.constant 0 : index
    %0 = vector.load %arg1[%c0, %c0_0] : memref<64x32xf32, #tpu.memory_space<vmem>>, vector<64x32xf32>
    %1 = arith.truncf %0 : vector<64x32xf32> to vector<64x32xbf16>
    %c0_1 = arith.constant 0 : index
    %c0_2 = arith.constant 0 : index
    %2 = vector.load %arg2[%c0_1, %c0_2] : memref<32x64xbf16, #tpu.memory_space<vmem>>, vector<32x64xbf16>
    %cst = arith.constant dense<0.000000e+00> : vector<64x64xf32>
    %3 = tpu.matmul %1, %2, %cst {dimension_numbers = #tpu.dot_dimension_numbers<[1], [0], [0], [1], [0, 0, 1, 1], [], []>} : vector<64x32xbf16>, vector<32x64xbf16>, vector<64x64xf32> -> vector<64x64xf32>
    %c0_3 = arith.constant 0 : index
    %c0_4 = arith.constant 0 : index
    %4 = vector.load %arg3[%c0_3, %c0_4] : memref<1x64xf32, #tpu.memory_space<vmem>>, vector<1x64xf32>
    %5 = vector.broadcast %4 : vector<1x64xf32> to vector<64x64xf32>
    %6 = arith.addf %3, %5 : vector<64x64xf32>
    %cst_5 = arith.constant 0.000000e+00 : f32
    %7 = vector.broadcast %cst_5 : f32 to vector<64x64xf32>
    %8 = arith.maximumf %6, %7 : vector<64x64xf32>
    %9 = arith.truncf %8 : vector<64x64xf32> to vector<64x64xbf16>
    %c0_6 = arith.constant 0 : index
    %c0_7 = arith.constant 0 : index
    %10 = vector.load %arg4[%c0_6, %c0_7] : memref<64x64xbf16, #tpu.memory_space<vmem>>, vector<64x64xbf16>
    %cst_8 = arith.constant dense<0.000000e+00> : vector<64x64xf32>
    %11 = tpu.matmul %9, %10, %cst_8 {dimension_numbers = #tpu.dot_dimension_numbers<[1], [0], [0], [1], [0, 0, 1, 1], [], []>} : vector<64x64xbf16>, vector<64x64xbf16>, vector<64x64xf32> -> vector<64x64xf32>
    %c0_9 = arith.constant 0 : index
    %c0_10 = arith.constant 0 : index
    %12 = vector.load %arg5[%c0_9, %c0_10] : memref<1x64xf32, #tpu.memory_space<vmem>>, vector<1x64xf32>
    %13 = vector.broadcast %12 : vector<1x64xf32> to vector<64x64xf32>
    %14 = arith.addf %11, %13 : vector<64x64xf32>
    %cst_11 = arith.constant 0.000000e+00 : f32
    %15 = vector.broadcast %cst_11 : f32 to vector<64x64xf32>
    %16 = arith.maximumf %14, %15 : vector<64x64xf32>
    %17 = arith.truncf %16 : vector<64x64xf32> to vector<64x64xbf16>
    %c0_12 = arith.constant 0 : index
    %c0_13 = arith.constant 0 : index
    %18 = vector.load %arg6[%c0_12, %c0_13] : memref<64x16xbf16, #tpu.memory_space<vmem>>, vector<64x16xbf16>
    %cst_14 = arith.constant dense<0.000000e+00> : vector<64x16xf32>
    %19 = tpu.matmul %17, %18, %cst_14 {dimension_numbers = #tpu.dot_dimension_numbers<[1], [0], [0], [1], [0, 0, 1, 1], [], []>} : vector<64x64xbf16>, vector<64x16xbf16>, vector<64x16xf32> -> vector<64x16xf32>
    %c0_15 = arith.constant 0 : index
    %c0_16 = arith.constant 0 : index
    %20 = vector.load %arg7[%c0_15, %c0_16] : memref<1x16xf32, #tpu.memory_space<vmem>>, vector<1x16xf32>
    %21 = vector.broadcast %20 : vector<1x16xf32> to vector<64x16xf32>
    %22 = arith.addf %19, %21 : vector<64x16xf32>
    %c0_17 = arith.constant 0 : index
    %c0_18 = arith.constant 0 : index
    %23 = vector.load %arg8[%c0_17, %c0_18] : memref<64x16xf32, #tpu.memory_space<vmem>>, vector<64x16xf32>
    tpu.vector_store %arg8[%c0_17, %c0_18], %22 {strides = array<i32>} : memref<64x16xf32, #tpu.memory_space<vmem>>, vector<64x16xf32>,
    return
  }
  func.func @transform_0(%arg0: i32) -> (i32, i32) {
    %c0_i32 = arith.constant 0 : i32
    %c0_i32_0 = arith.constant 0 : i32
    return %arg0, %c0_i32 : i32, i32
  }
  func.func @transform_1(%arg0: i32) -> (i32, i32) {
    %c0_i32 = arith.constant 0 : i32
    %c0_i32_0 = arith.constant 0 : i32
    %c0_i32_1 = arith.constant 0 : i32
    return %c0_i32, %c0_i32_0 : i32, i32
  }
  func.func @transform_2(%arg0: i32) -> (i32, i32) {
    %c0_i32 = arith.constant 0 : i32
    %c0_i32_0 = arith.constant 0 : i32
    %c0_i32_1 = arith.constant 0 : i32
    return %c0_i32, %c0_i32_0 : i32, i32
  }
  func.func @transform_3(%arg0: i32) -> (i32, i32) {
    %c0_i32 = arith.constant 0 : i32
    %c0_i32_0 = arith.constant 0 : i32
    %c0_i32_1 = arith.constant 0 : i32
    return %c0_i32, %c0_i32_0 : i32, i32
  }
  func.func @transform_4(%arg0: i32) -> (i32, i32) {
    %c0_i32 = arith.constant 0 : i32
    %c0_i32_0 = arith.constant 0 : i32
    %c0_i32_1 = arith.constant 0 : i32
    return %c0_i32, %c0_i32_0 : i32, i32
  }
  func.func @transform_5(%arg0: i32) -> (i32, i32) {
    %c0_i32 = arith.constant 0 : i32
    %c0_i32_0 = arith.constant 0 : i32
    %c0_i32_1 = arith.constant 0 : i32
    return %c0_i32, %c0_i32_0 : i32, i32
  }
  func.func @transform_6(%arg0: i32) -> (i32, i32) {
    %c0_i32 = arith.constant 0 : i32
    %c0_i32_0 = arith.constant 0 : i32
    %c0_i32_1 = arith.constant 0 : i32
    return %c0_i32, %c0_i32_0 : i32, i32
  }
  func.func @transform_7(%arg0: i32) -> (i32, i32) {
    %c0_i32 = arith.constant 0 : i32
    %c0_i32_0 = arith.constant 0 : i32
    return %arg0, %c0_i32 : i32, i32
  }
}

</mosaic_0001>

<bundles_post_ra>
// kernel: tpu_custom_call.1
= control target key start
LH: loop header
LB: loop body
LE: loop exit
PB: predicated region body
PF: predicated region fallthrough
CT: control target
= control target key end

     0   :  { %vm62_vm0 = vcmask 261120   ;;  %vm191_vm1 = vcmask 523264   ;;  %vm397_vm2 = vcmask 130048   ;;  %s658_s1 = inlined_call_operand.vmem [shape: bf16[32,64], index: 1, kind: input, shape index: {}]   ;;  %s659_s0 = inlined_call_operand.vmem [shape: f32[64,32], index: 0, kind: input, shape index: {}]   ;;  %s660_s3 = inlined_call_operand.vmem [shape: bf16[64,64], index: 3, kind: input, shape index: {}]   ;;  %s661_s5 = inlined_call_operand.vmem [shape: bf16[64,16], index: 5, kind: input, shape index: {}]   ;;  %s662_s2 = inlined_call_operand.vmem [shape: f32[1,64], index: 2, kind: input, shape index: {}]   ;;  %s663_s4 = inlined_call_operand.vmem [shape: f32[1,64], index: 4, kind: input, shape index: {}]   ;;  %s664_s6 = inlined_call_operand.vmem [shape: f32[1,16], index: 6, kind: input, shape index: {}]   ;;  %s665_s7 = inlined_call_operand.vmem [shape: f32[64,16], index: 7, kind: output, shape index: {}]  }
   0x1   :  { %v501_v0 = vld [vmem:[%s658_s1 + $0x8] sm:$0xff]   ;;  %v502_v1 = vld [vmem:[%s658_s1] sm:$0xff]   ;;  %v29_v5 = vld [vmem:[%s659_s0 + $0x10] sm:$0xff] }
   0x2   :  { %457 = vmatprep.subr.bf16.mxu0 %v501_v0  ;;  %v27_v2 = vld [vmem:[%s659_s0] sm:$0xff]  ;;  %v28_v3 = vld [vmem:[%s659_s0 + $0x8] sm:$0xff]  ;;  %v30_v6 = vld [vmem:[%s659_s0 + $0x18] sm:$0xff] }
   0x3   :  { %458 = vmatpush3.bf16.msra.mxu0 %v501_v0  ;;  %v35_v4 = vpack.c.bf16 %v28_v3, %v27_v2  ;;  %v31_v7 = vld [vmem:[%s659_s0 + $0x20] sm:$0xff]  ;;  %v32_v8 = vld [vmem:[%s659_s0 + $0x28] sm:$0xff]  ;;  %v503_v9 = vld [vmem:[%s660_s3 + $0x18] sm:$0xff]   ;;  %v36_v10 = vpack.c.bf16 %v30_v6, %v29_v5 }
   0x4   :  { %459 = vmatprep.subr.bf16.mxu0 %v502_v1  ;;  %v37_v11 = vpack.c.bf16 %v32_v8, %v31_v7  ;;  %469 = vmatprep.subr.bf16.mxu1 %v503_v9  ;;  %v33_v12 = vld [vmem:[%s659_s0 + $0x30] sm:$0xff]  ;;  %v34_v13 = vld [vmem:[%s659_s0 + $0x38] sm:$0xff]  ;;  %v505_v16 = vld [vmem:[%s660_s3 + $0x8] sm:$0xff]  }
   0x5   :  { %461 = vmatprep.mubr.msk.bf16.mxu0 %vm62_vm0, %v35_v4  ;;  %470 = vmatpush3.bf16.msra.mxu1 %v503_v9  ;;  %v38_v14 = vpack.c.bf16 %v34_v13, %v33_v12  ;;  %v504_v15 = vld [vmem:[%s660_s3 + $0x10] sm:$0xff]   ;;  %v506_v17 = vld [vmem:[%s660_s3] sm:$0xff]   ;;  %v507_v18 = vld [vmem:[%s661_s5 + $0x18] sm:$0xff]  }
   0x6   :  { %471 = vmatprep.subr.bf16.mxu1 %v504_v15  ;;  %v410_v21 = vld [vmem:[%s662_s2] ss:$0 sm:$0xff]  ;;  %v508_v48 = vld [vmem:[%s661_s5 + $0x10] sm:$0xff]   ;;  %v509_v49 = vld [vmem:[%s661_s5 + $0x8] sm:$0xff]  }
   0x7   :  { %460 = vmatpush3.bf16.msra.mxu0 %v502_v1  ;;  %v510_v50 = vld [vmem:[%s661_s5] sm:$0xff]  }
   0x8   :  { %485 = vmatprep.subr.bf16.mxu0 %v507_v18  ;;  %v417_v53 = vld [vmem:[%s663_s4] ss:$0 sm:$0xff] }
   0x9   :  { %472 = vmatpush3.bf16.msra.mxu1 %v504_v15 }
   0xa   :  { %462 = vmatmul.mubr.msk.bf16.vlgmr.msra.gmra.mxu0 %vm62_vm0, %v36_v10  ;;  %473 = vmatprep.subr.bf16.mxu1 %v505_v16 }
   0xb   :  { %465 = vmatprep.mubr.msk.bf16.mxu0 %vm62_vm0, %v37_v11  ;;  %486 = vmatpush3.bf16.msra.mxu0 %v507_v18 }
   0xc   :  { %487 = vmatprep.subr.bf16.mxu0 %v508_v48 }
   0xd   :  { %474 = vmatpush3.bf16.msra.mxu1 %v505_v16  ;;  %v426_v16 = vld [vmem:[%s664_s6] ss:$0 sm:$0xff] }
   0xe   :  { %475 = vmatprep.subr.bf16.mxu1 %v506_v17 }
   0xf   :  { %488 = vmatpush3.bf16.msra.mxu0 %v508_v48 }
  0x10   :  { %489 = vmatprep.subr.bf16.mxu0 %v509_v49 }
  0x11   :  { %476 = vmatpush3.bf16.msra.mxu1 %v506_v17 }
  0x12   :  { %466 = vmatmul.mubr.msk.bf16.gmra.mxu0 %vm62_vm0, %v38_v14 }
  0x13   :  { %490 = vmatpush3.bf16.msra.mxu0 %v509_v49 }
  0x14   :  { %491 = vmatprep.subr.bf16.mxu0 %v510_v50 }
  0x17   :  { %492 = vmatpush3.bf16.msra.mxu0 %v510_v50 }
  0xca   :  { %v463_v19 = vpop.f32.mrf.mxu0 }
  0xcb   :  { %v118_v25 = vadd.f32 %v463_v19, %v410_v21 }
  0xcc   :  { %v109_v20 = vpop.f32.mrf.mxu0 }
  0xcd   :  { %v110_v23 = vadd.f32 %v410_v21, %v109_v20  ;;  %v142_v32 = vmax.f32 %v118_v25, 0.0 }
  0xce   :  { %v464_v22 = vpop.f32.mrf.mxu0 }
  0xcf   :  { %v121_v24 = vadd.f32 %v464_v22, %v410_v21  ;;  %v140_v30 = vmax.f32 %v110_v23, 0.0 }
  0xd0   :  { %v112_v26 = vpop.f32.mrf.mxu0 }
  0xd1   :  { %v113_v27 = vadd.f32 %v410_v21, %v112_v26  ;;  %v143_v28 = vmax.f32 %v121_v24, 0.0 }
  0xd2   :  { %v467_v29 = vpop.f32.mrf.mxu0 }
  0xd3   :  { %v141_v31 = vmax.f32 %v113_v27, 0.0  ;;  %v149_v35 = vpack.c.bf16 %v143_v28, %v142_v32  ;;  %v134_v39 = vadd.f32 %v467_v29, %v410_v21 }
  0xd4   :  { %v125_v33 = vpop.f32.mrf.mxu0 }
  0xd5   :  { %v148_v34 = vpack.c.bf16 %v141_v31, %v140_v30  ;;  %v126_v37 = vadd.f32 %v410_v21, %v125_v33  ;;  %v146_v45 = vmax.f32 %v134_v39, 0.0 }
  0xd6   :  { %v468_v36 = vpop.f32.mrf.mxu0 }
  0xd7   :  { %v137_v38 = vadd.f32 %v468_v36, %v410_v21  ;;  %477 = vmatprep.mubr.msk.bf16.mxu1 %vm191_vm1, %v148_v34  ;;  %v144_v43 = vmax.f32 %v126_v37, 0.0 }
  0xd8   :  { %v128_v40 = vpop.f32.mrf.mxu0  ;;  %478 = vmatmul.mubr.msk.bf16.vlgmr.msra.gmra.mxu1 %vm191_vm1, %v149_v35 }
  0xd9   :  { %v129_v41 = vadd.f32 %v410_v21, %v128_v40  ;;  %v147_v42 = vmax.f32 %v137_v38, 0.0 }
  0xdb   :  { %v145_v44 = vmax.f32 %v129_v41, 0.0  ;;  %v151_v47 = vpack.c.bf16 %v147_v42, %v146_v45 }
  0xdd   :  { %v150_v46 = vpack.c.bf16 %v145_v44, %v144_v43 }
  0xdf   :  { %481 = vmatprep.mubr.msk.bf16.mxu1 %vm191_vm1, %v150_v46 }
  0xe0   :  { %482 = vmatmul.mubr.msk.bf16.gmra.mxu1 %vm191_vm1, %v151_v47 }
 0x198   :  { %v479_v51 = vpop.f32.mrf.mxu1 }
 0x199   :  { %v247_v57 = vadd.f32 %v479_v51, %v417_v53 }
 0x19a   :  { %v238_v52 = vpop.f32.mrf.mxu1 }
 0x19b   :  { %v239_v55 = vadd.f32 %v417_v53, %v238_v52  ;;  %v271_v0 = vmax.f32 %v247_v57, 0.0 }
 0x19c   :  { %v480_v54 = vpop.f32.mrf.mxu1 }
 0x19d   :  { %v250_v56 = vadd.f32 %v480_v54, %v417_v53  ;;  %v269_v62 = vmax.f32 %v239_v55, 0.0 }
 0x19e   :  { %v241_v58 = vpop.f32.mrf.mxu1 }
 0x19f   :  { %v242_v59 = vadd.f32 %v417_v53, %v241_v58  ;;  %v272_v60 = vmax.f32 %v250_v56, 0.0 }
 0x1a0   :  { %v483_v61 = vpop.f32.mrf.mxu1 }
 0x1a1   :  { %v270_v63 = vmax.f32 %v242_v59, 0.0  ;;  %v278_v3 = vpack.c.bf16 %v272_v60, %v271_v0  ;;  %v263_v7 = vadd.f32 %v483_v61, %v417_v53 }
 0x1a2   :  { %v254_v1 = vpop.f32.mrf.mxu1 }
 0x1a3   :  { %v277_v2 = vpack.c.bf16 %v270_v63, %v269_v62  ;;  %v255_v5 = vadd.f32 %v417_v53, %v254_v1  ;;  %v275_v13 = vmax.f32 %v263_v7, 0.0 }
 0x1a4   :  { %v484_v4 = vpop.f32.mrf.mxu1 }
 0x1a5   :  { %v266_v6 = vadd.f32 %v484_v4, %v417_v53  ;;  %493 = vmatprep.mubr.msk.bf16.mxu0 %vm191_vm1, %v277_v2  ;;  %v273_v11 = vmax.f32 %v255_v5, 0.0 }
 0x1a6   :  { %v257_v8 = vpop.f32.mrf.mxu1  ;;  %494 = vmatmul.mubr.msk.bf16.vlgmr.msra.gmra.mxu0 %vm191_vm1, %v278_v3 }
 0x1a7   :  { %v258_v9 = vadd.f32 %v417_v53, %v257_v8  ;;  %v276_v10 = vmax.f32 %v266_v6, 0.0 }
 0x1a9   :  { %v274_v12 = vmax.f32 %v258_v9, 0.0  ;;  %v280_v15 = vpack.c.bf16 %v276_v10, %v275_v13 }
 0x1ab   :  { %v279_v14 = vpack.c.bf16 %v274_v12, %v273_v11 }
 0x1ad   :  { %497 = vmatprep.mubr.msk.bf16.mxu0 %vm191_vm1, %v279_v14 }
 0x1ae   :  { %498 = vmatmul.mubr.msk.bf16.gmra.mxu0 %vm191_vm1, %v280_v15 }
 0x266   :  { %v495_v17 = vpop.f32.mrf.mxu0 }
 0x267   :  { %v375_v18 = vadd.f32 %v495_v17, %v426_v16 }
 0x268   :  { %v366_v19 = vpop.f32.mrf.mxu0 }
 0x269   :  { %400 = vst.msk [vmem:[%s665_s7 + $0x10] sm:$0xff] %vm397_vm2, %v375_v18  ;;  %v367_v20 = vadd.f32 %v426_v16, %v366_v19 }
 0x26a   :  { %v496_v21 = vpop.f32.mrf.mxu0 }
 0x26b   :  { %398 = vst.msk [vmem:[%s665_s7] sm:$0xff] %vm397_vm2, %v367_v20  ;;  %v378_v22 = vadd.f32 %v496_v21, %v426_v16 }
 0x26c   :  { %v369_v23 = vpop.f32.mrf.mxu0 }
 0x26d   :  { %401 = vst.msk [vmem:[%s665_s7 + $0x18] sm:$0xff] %vm397_vm2, %v378_v22  ;;  %v370_v24 = vadd.f32 %v426_v16, %v369_v23 }
 0x26e   :  { %v499_v25 = vpop.f32.mrf.mxu0 }
 0x26f   :  { %399 = vst.msk [vmem:[%s665_s7 + $0x8] sm:$0xff] %vm397_vm2, %v370_v24  ;;  %v391_v26 = vadd.f32 %v499_v25, %v426_v16 }
 0x270   :  { %v382_v27 = vpop.f32.mrf.mxu0 }
 0x271   :  { %404 = vst.msk [vmem:[%s665_s7 + $0x30] sm:$0xff] %vm397_vm2, %v391_v26  ;;  %v383_v28 = vadd.f32 %v426_v16, %v382_v27 }
 0x272   :  { %v500_v29 = vpop.f32.mrf.mxu0 }
 0x273   :  { %402 = vst.msk [vmem:[%s665_s7 + $0x20] sm:$0xff] %vm397_vm2, %v383_v28  ;;  %v394_v30 = vadd.f32 %v500_v29, %v426_v16 }
 0x274   :  { %v385_v31 = vpop.f32.mrf.mxu0 }
 0x275   :  { %405 = vst.msk [vmem:[%s665_s7 + $0x38] sm:$0xff] %vm397_vm2, %v394_v30  ;;  %v386_v32 = vadd.f32 %v426_v16, %v385_v31 }
 0x277   :  { %403 = vst.msk [vmem:[%s665_s7 + $0x28] sm:$0xff] %vm397_vm2, %v386_v32 }

</bundles_post_ra>
